<compile_context>
chip_gen: v7x
topology: tpu7x:2x2x1
jax: 0.10.0
libtpu: 0.0.40
codegen_flags: <defaults>
</compile_context>

<pallas_src>
import functools

import numpy as np
import jax
import jax.numpy as jnp
from jax import lax
from jax.experimental import pallas as pl
from jax.experimental.pallas import tpu as pltpu


def mmcenters_np(N=10, d=1.0):
    """Deterministic re-implementation of MMcenters from the PyTorch module."""
    nodes = np.zeros((N, N - 1), dtype=np.float64)
    nodes[0, 0] = d / 2.0
    nodes[1, 0] = -d / 2.0
    for i in range(2, N):
        r = np.sqrt((nodes[0] ** 2).sum())
        c = np.sqrt(d ** 2 - r ** 2)
        a = (d ** 2 - 2 * r ** 2) / c / 2.0
        b = d ** 2 / c / 2.0
        nodes[:i, i - 1] -= a
        nodes[i, i - 1] += b
    return nodes.astype(np.float32)


def make_centers_t_padded(N, d, F):
    """Host-side: centers.T zero-padded to (F, N) so the full x (B, F) can be fed
    directly (rows N-1..F-1 of cT are zero and contribute nothing to the matmul)."""
    c = mmcenters_np(N, d)                      # (N, N-1)
    assert F >= N - 1, "feature dim must be >= N-1"
    ct = np.zeros((F, N), dtype=np.float32)
    ct[: N - 1, :] = c.T
    return jnp.asarray(ct)


def _mmd_loss_kernel(x_ref, ct_ref, lab_ref, out_ref, acc_ref, *, B, TB, N, mask_tail):
    # x_ref:   (TB, F) f32   batch tile of features (full F, no pre-slice)
    # ct_ref:  (F, N)  f32   centers^T, zero-padded; resident across grid steps
    # lab_ref: (TB, 1) i32   label tile
    # out_ref: (1, 1)  f32   mean cross-entropy loss (written once at last step)
    # acc_ref: (1, 1)  f32   VMEM scratch: running sum of per-example CE
    i = pl.program_id(0)

    @pl.when(i == 0)
    def _():
        acc_ref[...] = jnp.zeros_like(acc_ref)

    x = x_ref[...]                                              # (TB, F) f32
    ct = ct_ref[...]                                            # (F, N)  f32

    # logits = x @ centers.T  (padded rows of ct are zero) -> (TB, N) on the MXU.
    logits = jnp.dot(x, ct, preferred_element_type=jnp.float32)

    # Numerically stable log-softmax cross-entropy (all f32).
    m = jnp.max(logits, axis=-1, keepdims=True)                 # (TB, 1)
    lse = jnp.log(jnp.sum(jnp.exp(logits - m), axis=-1, keepdims=True)) + m

    # one-hot(label) via iota compare (no gather on TPU).
    col = lax.broadcasted_iota(jnp.int32, (TB, N), 1)           # (TB, N)
    onehot = (col == lab_ref[...]).astype(jnp.float32)          # (TB, N)
    picked = jnp.sum(onehot * logits, axis=-1, keepdims=True)   # (TB, 1)

    per_example = lse - picked                                  # (TB, 1)

    if mask_tail:
        # Mask rows past the true batch size in the (possibly partial) last tile.
        row = lax.broadcasted_iota(jnp.int32, (TB, 1), 0) + i * TB
        per_example = jnp.where(row < B, per_example, 0.0)

    acc_ref[...] += jnp.sum(per_example, axis=(0, 1), keepdims=True)

    @pl.when(i == pl.num_programs(0) - 1)
    def _():
        out_ref[...] = acc_ref[...] / B                         # mean over true B


def mmd_loss(x, labels, centers_t_padded, *, N=10, block_b=512):
    """forward(x, labels) of MMDLoss.  x: (B, F) f32, labels: (B,) int,
    centers_t_padded: (F, N) f32 from make_centers_t_padded."""
    B, F = x.shape
    assert centers_t_padded.shape == (F, N)

    # Batch tile: multiple of 8 sublanes when tiling; otherwise a single
    # full-batch block (always a legal block shape).
    if B % 8 == 0 and B > block_b:
        TB = block_b
    else:
        TB = B
    num_tiles = pl.cdiv(B, TB)
    mask_tail = (B % TB) != 0

    lab2d = labels.astype(jnp.int32).reshape(B, 1)

    kernel = functools.partial(
        _mmd_loss_kernel, B=B, TB=TB, N=N, mask_tail=mask_tail
    )

    out = pl.pallas_call(
        kernel,
        out_shape=jax.ShapeDtypeStruct((1, 1), jnp.float32),
        grid=(num_tiles,),
        in_specs=[
            pl.BlockSpec((TB, F), lambda i: (i, 0)),    # x batch tile (pipelined)
            pl.BlockSpec((F, N), lambda i: (0, 0)),     # centers^T, resident
            pl.BlockSpec((TB, 1), lambda i: (i, 0)),    # labels tile
        ],
        out_specs=pl.BlockSpec((1, 1), lambda i: (0, 0)),
        scratch_shapes=[pltpu.VMEM((1, 1), jnp.float32)],
        compiler_params=pltpu.CompilerParams(
            dimension_semantics=("arbitrary",),         # reduction over batch tiles
        ),
        cost_estimate=pl.CostEstimate(
            flops=2 * B * F * N + 6 * B * N,
            transcendentals=B * (N + 1),
            bytes_accessed=B * F * 4 + B * 4 + F * N * 4 + 4,
        ),
    )(x.astype(jnp.float32), centers_t_padded, lab2d)
    return out[0, 0]


def mmd_loss_ref(x, labels, centers, N=10):
    """Pure-JAX reference for correctness check (mirrors the PyTorch module)."""
    xc = x[:, : N - 1].astype(jnp.float32)
    logits = xc @ centers.T
    logp = jax.nn.log_softmax(logits, axis=-1)
    nll = -jnp.take_along_axis(logp, labels.astype(jnp.int32)[:, None], axis=-1)
    return jnp.mean(nll)


if __name__ == "__main__":
    N, d = 10, 1.0
    B, F = 16, 16  # batch, feature dim (>= N-1)
    # NOTE: at this size the op is dominated by fixed per-call overhead; in a real
    # model this loss would normally be fused into the producing layer by XLA.

    centers = jnp.asarray(mmcenters_np(N, d))            # (10, 9) — for the reference
    ct_padded = make_centers_t_padded(N, d, F)           # (16, 10) — kernel constant

    key = jax.random.PRNGKey(0)
    kx, kl = jax.random.split(key)
    x = jax.random.normal(kx, (B, F), dtype=jnp.float32)
    labels = jax.random.randint(kl, (B,), 0, N, dtype=jnp.int32)

    # Exercise the multi-tile accumulator path (block_b=8 -> 2 grid steps)...
    loss_tiled = mmd_loss(x, labels, ct_padded, N=N, block_b=8)
    loss_tiled = jax.block_until_ready(loss_tiled)
    # ...and the single-block path.
    loss = mmd_loss(x, labels, ct_padded, N=N)
    loss = jax.block_until_ready(loss)

    ref = mmd_loss_ref(x, labels, centers, N=N)
    assert jnp.allclose(loss, ref, atol=1e-5, rtol=1e-5), (loss, ref)
    assert jnp.allclose(loss_tiled, ref, atol=1e-5, rtol=1e-5), (loss_tiled, ref)

    print("KERNEL_OK")
</pallas_src>

<mosaic_0001>
module attributes {stable_mosaic.version = 11 : i64} {
  func.func @_mmd_loss_kernel(%arg0: i32, %arg1: memref<8x16xf32, #tpu.memory_space<vmem>>, %arg2: memref<16x10xf32, #tpu.memory_space<vmem>>, %arg3: memref<8x1xi32, #tpu.memory_space<vmem>>, %arg4: memref<1x1xf32, #tpu.memory_space<vmem>>, %arg5: memref<1x1xf32, #tpu.memory_space<vmem>>) attributes {dimension_semantics = [#tpu.dimension_semantics<arbitrary>], iteration_bounds = array<i64: 2>, scalar_prefetch = 0 : i64, scratch_operands = 1 : i64, tpu.core_type = #tpu.core_type<tc>, window_params = [{transform_indices = @transform_0, window_bounds = array<i64: 8, 16>}, {pipeline_mode = #tpu.pipeline_mode<synchronous>, transform_indices = @transform_1, window_bounds = array<i64: 16, 10>}, {transform_indices = @transform_2, window_bounds = array<i64: 8, 1>}, {pipeline_mode = #tpu.pipeline_mode<synchronous>, transform_indices = @transform_3, window_bounds = array<i64: 1, 1>}]} {
    %c0_i32 = arith.constant 0 : i32
    %0 = arith.cmpi eq, %arg0, %c0_i32 : i32
    %1 = arith.extui %0 : i1 to i32
    %c0_i32_0 = arith.constant 0 : i32
    %2 = arith.cmpi ne, %1, %c0_i32_0 : i32
    scf.if %2 {
      %cst_15 = arith.constant 0.000000e+00 : f32
      %36 = vector.broadcast %cst_15 : f32 to vector<1x1xf32>
      %c0_16 = arith.constant 0 : index
      %c0_17 = arith.constant 0 : index
      %37 = vector.load %arg5[%c0_16, %c0_17] : memref<1x1xf32, #tpu.memory_space<vmem>>, vector<1x1xf32>
      tpu.vector_store %arg5[%c0_16, %c0_17], %36 {strides = array<i32>} : memref<1x1xf32, #tpu.memory_space<vmem>>, vector<1x1xf32>,
    } else {
    }
    %c0 = arith.constant 0 : index
    %c0_1 = arith.constant 0 : index
    %3 = vector.load %arg1[%c0, %c0_1] : memref<8x16xf32, #tpu.memory_space<vmem>>, vector<8x16xf32>
    %c0_2 = arith.constant 0 : index
    %c0_3 = arith.constant 0 : index
    %4 = vector.load %arg2[%c0_2, %c0_3] : memref<16x10xf32, #tpu.memory_space<vmem>>, vector<16x10xf32>
    %cst = arith.constant dense<0.000000e+00> : vector<8x10xf32>
    %5 = tpu.matmul %3, %4, %cst {dimension_numbers = #tpu.dot_dimension_numbers<[1], [0], [0], [1], [0, 0, 1, 1], [], []>} : vector<8x16xf32>, vector<16x10xf32>, vector<8x10xf32> -> vector<8x10xf32>
    %cst_4 = arith.constant dense<0xFF800000> : vector<8xf32>
    %6 = vector.multi_reduction <maximumf>, %5, %cst_4 [1] : vector<8x10xf32> to vector<8xf32>
    %7 = vector.shape_cast %6 : vector<8xf32> to vector<8x1xf32>
    %8 = vector.broadcast %7 : vector<8x1xf32> to vector<8x10xf32>
    %9 = arith.subf %5, %8 : vector<8x10xf32>
    %10 = math.exp %9 : vector<8x10xf32>
    %cst_5 = arith.constant dense<0.000000e+00> : vector<8xf32>
    %11 = vector.multi_reduction <add>, %10, %cst_5 [1] : vector<8x10xf32> to vector<8xf32>
    %12 = vector.shape_cast %11 : vector<8xf32> to vector<8x1xf32>
    %13 = math.log %12 : vector<8x1xf32>
    %14 = arith.addf %13, %7 : vector<8x1xf32>
    %15 = tpu.iota {dimensions = array<i32: 1>} : vector<8x10xi32>
    %c0_6 = arith.constant 0 : index
    %c0_7 = arith.constant 0 : index
    %16 = vector.load %arg3[%c0_6, %c0_7] : memref<8x1xi32, #tpu.memory_space<vmem>>, vector<8x1xi32>
    %17 = vector.broadcast %16 : vector<8x1xi32> to vector<8x10xi32>
    %18 = arith.cmpi eq, %15, %17 : vector<8x10xi32>
    %19 = arith.extui %18 : vector<8x10xi1> to vector<8x10xi32>
    %20 = arith.sitofp %19 : vector<8x10xi32> to vector<8x10xf32>
    %21 = arith.mulf %20, %5 : vector<8x10xf32>
    %cst_8 = arith.constant dense<0.000000e+00> : vector<8xf32>
    %22 = vector.multi_reduction <add>, %21, %cst_8 [1] : vector<8x10xf32> to vector<8xf32>
    %23 = vector.shape_cast %22 : vector<8xf32> to vector<8x1xf32>
    %24 = arith.subf %14, %23 : vector<8x1xf32>
    %c0_9 = arith.constant 0 : index
    %c0_10 = arith.constant 0 : index
    %25 = vector.load %arg5[%c0_9, %c0_10] : memref<1x1xf32, #tpu.memory_space<vmem>>, vector<1x1xf32>
    %26 = vector.shape_cast %24 : vector<8x1xf32> to vector<1x8x1xf32>
    %cst_11 = arith.constant dense<0.000000e+00> : vector<1xf32>
    %27 = vector.multi_reduction <add>, %26, %cst_11 [1, 2] : vector<1x8x1xf32> to vector<1xf32>
    %28 = vector.shape_cast %27 : vector<1xf32> to vector<1x1x1xf32>
    %29 = vector.extract %28[0, 0, 0] : f32 from vector<1x1x1xf32>
    %30 = vector.broadcast %29 : f32 to vector<1x1xf32>
    %31 = arith.addf %25, %30 : vector<1x1xf32>
    %c0_12 = arith.constant 0 : index
    %c0_13 = arith.constant 0 : index
    %32 = vector.load %arg5[%c0_12, %c0_13] : memref<1x1xf32, #tpu.memory_space<vmem>>, vector<1x1xf32>
    tpu.vector_store %arg5[%c0_12, %c0_13], %31 {strides = array<i32>} : memref<1x1xf32, #tpu.memory_space<vmem>>, vector<1x1xf32>,
    %c1_i32 = arith.constant 1 : i32
    %33 = arith.cmpi eq, %arg0, %c1_i32 : i32
    %34 = arith.extui %33 : i1 to i32
    %c0_i32_14 = arith.constant 0 : i32
    %35 = arith.cmpi ne, %34, %c0_i32_14 : i32
    scf.if %35 {
      %c0_15 = arith.constant 0 : index
      %c0_16 = arith.constant 0 : index
      %36 = vector.load %arg5[%c0_15, %c0_16] : memref<1x1xf32, #tpu.memory_space<vmem>>, vector<1x1xf32>
      %cst_17 = arith.constant 1.600000e+01 : f32
      %37 = vector.broadcast %cst_17 : f32 to vector<1x1xf32>
      %38 = arith.divf %36, %37 : vector<1x1xf32>
      %c0_18 = arith.constant 0 : index
      %c0_19 = arith.constant 0 : index
      %39 = vector.load %arg4[%c0_18, %c0_19] : memref<1x1xf32, #tpu.memory_space<vmem>>, vector<1x1xf32>
      tpu.vector_store %arg4[%c0_18, %c0_19], %38 {strides = array<i32>} : memref<1x1xf32, #tpu.memory_space<vmem>>, vector<1x1xf32>,
    } else {
    }
    return
  }
  func.func @transform_0(%arg0: i32) -> (i32, i32) {
    %c0_i32 = arith.constant 0 : i32
    %c0_i32_0 = arith.constant 0 : i32
    return %arg0, %c0_i32 : i32, i32
  }
  func.func @transform_1(%arg0: i32) -> (i32, i32) {
    %c0_i32 = arith.constant 0 : i32
    %c0_i32_0 = arith.constant 0 : i32
    %c0_i32_1 = arith.constant 0 : i32
    return %c0_i32, %c0_i32_0 : i32, i32
  }
  func.func @transform_2(%arg0: i32) -> (i32, i32) {
    %c0_i32 = arith.constant 0 : i32
    %c0_i32_0 = arith.constant 0 : i32
    return %arg0, %c0_i32 : i32, i32
  }
  func.func @transform_3(%arg0: i32) -> (i32, i32) {
    %c0_i32 = arith.constant 0 : i32
    %c0_i32_0 = arith.constant 0 : i32
    %c0_i32_1 = arith.constant 0 : i32
    return %c0_i32, %c0_i32_0 : i32, i32
  }
}

</mosaic_0001>

<bundles_post_ra>
// kernel: tpu_custom_call.1
= control target key start
LH: loop header
LB: loop body
LE: loop exit
PB: predicated region body
PF: predicated region fallthrough
CT: control target
= control target key end

     0   :  { %8 = vsyncpa [#allocation4], 0  ;;  %s644_s0 = inlined_call_operand.vmem [shape: f32[16,16], index: 0, kind: input, shape index: {}]   ;;  %s645_s1 = inlined_call_operand.hbm [shape: f32[16,10], index: 1, kind: input, shape index: {}]   ;;  %s646_s2 = inlined_call_operand.vmem [shape: s32[16,1], index: 2, kind: input, shape index: {}]   ;;  %s647_s3 = inlined_call_operand.hbm [shape: f32[1,1], index: 3, kind: output, shape index: {}]  }
   0x1   :  { %9 = vsyncpa [#allocation5], 0  ;;  %s558_s12 = smov 0  }
   0x2 LB: > { %s564_s13 = sadd.s32 4294967295, %s527_s12   ;;  %p391_p0 = scmp.ge.s32.totalorder %s527_s12, 1  ;;  %s527_s12 = sphi %s558_s12, %s15_s12  }
   0x3   : > { %p114_p1 = scmp.lt.s32.totalorder %s527_s12, 3  ;;  %s529_s14 = smov [#allocation3]  }
   0x4   : > { %s126_s15 = sshll.u32 %s529_s14, 4  ;;  %p648_p4 = scmp.eq.s32.totalorder %s564_s13, 0  ;;  %s127_s15 = int_to_ptr.vmem [resolvable:$true] %s126_s15 }
   0x5   : > { %p569_p3 = pnand %p391_p0, %p114_p1  ;;  %s459_s20 = scalar_lea.hbm %s645_s1, 256 }
   0x6   : > { %p460_p7 = scmp.ne.s32.totalorder %s645_s1, %s459_s20  ;;  %p466_p11 = scmp.lt.u32.totalorder %s459_s20, %s645_s1 }
   0x7   : > { %s650_s16 = scalar_select %p569_p3, 1, 0 }
   0x8   : > { %p429_p5 = pneg %p569_p3 }
   0xa   : > { %p578_p6 = pnand %p648_p4, %p429_p5 }
   0xc   : > { %p461_p8 = pneg %p578_p6 }
   0xe   : > { %p462_p9 = pnand %p461_p8, %p460_p7 }
  0x10   : > { %p463_p10 = pneg %p462_p9 }
  0x12   : > { %p468_p12 = pnand %p466_p11, %p463_p10 }
  0x14   : > { %471 = shalt.err (!%p468_p12)
}
  0x15   : > { %s472_s25 = scalar_lea.vmem %s127_s15, 256  ;;  %p480_p5 = scmp.lt.s32.totalorder %s127_s15, %s127_s15 }
  0x16   : > { %p473_p13 = scmp.ne.s32.totalorder %s127_s15, %s472_s25  ;;  %p481_p2 = scmp.lt.s32.totalorder %s472_s25, %s472_s25 }
  0x18   : > { %p475_p0 = pnand %p473_p13, %p461_p8  ;;  %p482_p4 = por %p481_p2, %p480_p5 }
  0x1a   : > { %p476_p1 = pneg %p475_p0 }
  0x1c   : > { %p483_p3 = pnand %p482_p4, %p476_p1 }
  0x1e   : > { %486 = shalt.err (!%p483_p3)
}
  0x1f   : > { %s530_s26 = smov 128   ;;  %s531_s27 = smov 8  }
  0x20   : > { %432 = dma.hbm_to_vmem [thread:$0]  (!%p578_p6), %s645_s1, 256, %s127_s15, [#allocation4], %s530_s26, %s530_s26, %s531_s27  }
  0x21   : > { %p652_p7 = scmp.ne.s32.totalorder %s650_s16, 0 }
  0x22   : > { %p653_p9 = scmp.eq.s32.totalorder (!%p652_p7), %s564_s13, 0 }
  0x23   : > { %156 = sbr.rel (%p652_p7) target bundleno = 833 (0x341), region = 32 }
  0x2a   : > { %518 = dma.done.wait (%p653_p9), [#allocation4], 256   ;;  %p654_p8 = pmov %p653_p9 }
  0x2b   : > { %p178_p2 = scmp.lt.s32.totalorder %s564_s13, 1  ;;  %p655_p3 = scmp.ne.s32.totalorder %s564_s13, 0 }
  0x2c   : > { %520 = vsyncadd (%p654_p8), [#allocation4], 4294967040  ;;  %vm190_vm0 = vcmask (!%p655_p3), 0   ;;  %v532_v0 = vmov (!%p655_p3), 0.0  }
  0x2d   : > { %s179_s30 = scalar_select %p178_p2, %s564_s13, 1 }
  0x2e   : > { %189 = sbr.rel (%p655_p3) target bundleno = 53 (0x35), region = 40  ;;  %191 = vst.msk [vmem:[#allocation2] sm:$0x1] (!%p655_p3), %vm190_vm0, %v532_v0 }
  0x2f   : > { %s396_s4 = sshll.u32 %s179_s30, 3 }
  0x30   : > { %s181_s7 = scalar_lea.vmem %s644_s0, %s396_s4  ;;  %s185_s10 = scalar_lea.vmem %s646_s2, %s396_s4 }
  0x35 PF: > { %v193_v1 = vld [vmem:[#allocation3] sm:$0xff]  ;;  %v194_v2 = vld [vmem:[#allocation3 + $0x8] sm:$0xff]  ;;  %v533_v3 = vmov 0.0|0.0   ;;  %vm534_vm1 = vmmov 0   ;;  %v535_v5 = vmov 0.0   ;;  %vm195_vm2 = vcmask 130048  }
  0x36   : > { %416 = vmatprep.subr.bf16.mxu0 %v533_v3  ;;  %v417_v4 = vpack.c.bf16 %v194_v2, %v193_v1  ;;  %413 = vmatprep.mubr.msk.f32.mxu0 %vm534_vm1, %v535_v5  ;;  %v192_v6 = vld [vmem:[%s181_s7] sm:$0xff]  ;;  %v536_v7 = vmov 0   ;;  %vm269_vm3 = vcmask 80896   ;;  %v282_v14 = vlaneseq  ;;  %p401_p4 = scmp.ne.s32.totalorder %s564_s13, 1 }
  0x37   : > { %454 = vset.pattern.permute.xlu0 %v536_v7  ;;  %v284_v11 = vld [vmem:[%s185_s10] sm:$0xff]  ;;  %vm297_vm5 = vcmask 7168   ;;  %vm310_vm6 = vcmask 0  }
  0x38   : > { %418 = vmatpush3.bf16.msra.mxu0 %v417_v4  ;;  %v283_v16 = vand.u32 127, %v282_v14  ;;  %v296_v37 = vld [vmem:[#allocation2] sm:$0x1] }
  0x3b   : > { %414 = vmatmul.mubr.msk.f32.vlgmr.msra.gmra.mrb[0].mxu0 %vm195_vm2, %v192_v6 }
 0x10e   : > { %v265_v8 = vpop.f32.mrb[0].mxu0 }
 0x10f   : > { %v415_v9 = vpop.f32.mrb[1].mxu0  ;;  %v270_v10 = vsel %vm269_vm3, %v265_v8, -inf }
 0x110   : > { %271 = vmax.xlane.f32.xlu0 %v270_v10 }
 0x126   : > { %286 = vperm.xlu0 %454, %v284_v11  }
 0x19d   : > { %v272_v12 = vpop.xlane.xlu0 %271 }
 0x19e   : > { %v273_v13 = vsub.f32 %v265_v8, %v272_v12 }
 0x1a0   : > { %v274_v15 = vmul.f32 1.442695, %v273_v13 }
 0x1a2   : > { %455 = vpow2.f32 %v274_v15 }
 0x1a5   : > { %v287_v17 = vpop.permute.xlu0 %286 }
 0x1a6   : > { %vm288_vm4 = vcmp.eq.s32.totalorder %v283_v16, %v287_v17 }
 0x1a7   : > { %v400_v18 = vsel %vm288_vm4, 1.0, %v535_v5 }
 0x1a8   : > { %v291_v21 = vmul.f32 %v400_v18, %v265_v8 }
 0x1aa   : > { %v292_v22 = vsel %vm269_vm3, %v291_v21, 0.0 }
 0x1ac   : > { %v456_v19 = vpop.eup %455 }
 0x1ad   : > { %v276_v20 = vsel %vm269_vm3, %v456_v19, 0.0 }
 0x1ae   : > { %277 = vadd.xlane.f32.xlu1 %v276_v20 }
 0x1b2   : > { %293 = vadd.xlane.f32.xlu1 %v292_v22 }
 0x23b   : > { %v278_v23 = vpop.xlane.xlu1 %277 }
 0x23c   : > { %457 = vlog2.f32 %v278_v23 }
 0x23f   : > { %v294_v27 = vpop.xlane.xlu1 %293 }
 0x246   : > { %v458_v24 = vpop.eup %457 }
 0x247   : > { %v280_v25 = vmul.f32 0.6931472, %v458_v24 }
 0x249   : > { %v281_v26 = vadd.f32 %v280_v25, %v272_v12 }
 0x24b   : > { %v295_v28 = vsub.f32 %v281_v26, %v294_v27 }
 0x24d   : > { %v298_v29 = vsel %vm297_vm5, %v295_v28, 0.0 }
 0x24e   : > { %299 = vadd.xlane.f32.xlu1 %v298_v29 }
 0x2db   : > { %v300_v30 = vpop.xlane.xlu1 %299 }
 0x2dc   : > { %v301_v31 = vrot.slane %v300_v30, 4 }
 0x2de   : > { %v302_v32 = vadd.f32 %v301_v31, %v300_v30 }
 0x2e0   : > { %v303_v33 = vrot.slane %v302_v32, 2 }
 0x2e2   : > { %v304_v34 = vadd.f32 %v303_v33, %v302_v32 }
 0x2e4   : > { %v305_v35 = vrot.slane %v304_v34, 1 }
 0x2e6   : > { %v306_v36 = vadd.f32 %v305_v35, %v304_v34 }
 0x2e8   : > { %419 = vpush %v306_v36 }
 0x317   : > { %315 = sbr.rel (%p401_p4) target bundleno = 808 (0x328), region = 44 }
 0x319   : > { %s420_s11 = spop %419 }
 0x31a   : > { %v308_v38 = vstv %s420_s11 }
 0x31b   : > { %v309_v39 = vadd.f32 %v308_v38, %v296_v37 }
 0x31d   : > { %311 = vst.msk [vmem:[#allocation2] sm:$0x1] %vm310_vm6, %v309_v39 }
 0x324   : > { %v316_v40 = vld [vmem:[#allocation2] sm:$0x1] }
 0x325   : > { %v318_v41 = vmul.f32 0.0625, %v316_v40 }
 0x327   : > { %319 = vst.msk [vmem:[#allocation6] sm:$0x1] %vm310_vm6, %v318_v41 }
 0x328 PF: > { %p435_p6 = scmp.eq.s32.totalorder %s564_s13, 1  ;;  %s537_s14 = smov [#allocation6]  }
 0x329   : > { %s327_s15 = sshll.u32 %s537_s14, 4  ;;  %s328_s15 = int_to_ptr.vmem [resolvable:$true] %s327_s15 }
 0x32a   : > { %s487_s16 = scalar_lea.vmem %s328_s15, 16  ;;  %s493_s17 = scalar_lea.vmem %s328_s15, 32 }
 0x32b   : > { %p488_p10 = scmp.ne.s32.totalorder %s328_s15, %s487_s16  ;;  %p494_p13 = scmp.lt.s32.totalorder %s328_s15, %s328_s15 }
 0x32c   : > { %p495_p0 = scmp.lt.s32.totalorder %s493_s17, %s487_s16 }
 0x32d   : > { %p489_p11 = pnand %p488_p10, %p435_p6 }
 0x32e   : > { %p496_p1 = por %p495_p0, %p494_p13 }
 0x32f   : > { %p490_p12 = pneg %p489_p11 }
 0x331   : > { %p497_p5 = pnand %p496_p1, %p490_p12 }
 0x333   : > { %500 = shalt.err (!%p497_p5)
}
 0x334   : > { %s501_s20 = scalar_lea.hbm %s647_s3, 16 }
 0x335   : > { %p502_p7 = scmp.ne.s32.totalorder %s647_s3, %s501_s20  ;;  %p507_p2 = scmp.lt.u32.totalorder %s501_s20, %s647_s3 }
 0x337   : > { %p503_p9 = pnand %p502_p7, %p435_p6 }
 0x339   : > { %p504_p8 = pneg %p503_p9 }
 0x33b   : > { %p509_p3 = pnand %p507_p2, %p504_p8 }
 0x33d   : > { %512 = shalt.err (!%p509_p3)
}
 0x33e   : > { %426 = dma.vmem_to_hbm [thread:$0]  (%p435_p6), %s328_s15, 16, %s647_s3, [#allocation5]  }
 0x33f   : > { %522 = dma.done.wait (%p435_p6), [#allocation5], 16  }
 0x340   : > { %524 = vsyncadd (%p435_p6), [#allocation5], 4294967280 }
 0x341 PF: > { %s15_s12 = sadd.s32 1, %s527_s12  }
 0x342   : > { %p12_p4 = scmp.ge.s32.totalorder %s15_s12, 4  }
 0x344   :  { %14 = sbr.rel (!%p12_p4) target bundleno = 2 (0x2), region = 75 }
 0x34b   :  { %340 = vsyncpa [#allocation4], 1 }
 0x34c   :  { %342 = vsyncpa [#allocation4 + $0x1], 1 }
 0x34d   :  { %343 = vsyncpa [#allocation5], 1 }
 0x34e   :  { %345 = vsyncpa [#allocation5 + $0x1], 1 }

</bundles_post_ra>
